<compile_context>
chip_gen: v6e
topology: v6e:2x2x1
jax: 0.10.0
libtpu: 0.0.40
codegen_flags: <defaults>
</compile_context>

<pallas_src>
import functools

import jax
import jax.numpy as jnp
from jax import lax
from jax.experimental import pallas as pl
from jax.experimental.pallas import tpu as pltpu


# ---------------------------------------------------------------------------
# Pallas kernel: fused conv3x3-as-matmul + bias + ReLU + global-avg-pool + FC
# ---------------------------------------------------------------------------
def backbone_kernel(x_ref, w1_ref, b1_ref, w2_ref, b2_ref, out_ref, *, hw, inv_hw):
    # x_ref  : (nb, hwp, Kp)     lane-dense im2col patches, bf16
    # w1_ref : (Kp, CMID_P)      conv weights (tap-major rows), bf16
    # b1_ref : (1, CMID_P)       f32
    # w2_ref : (CMID_P, NC_P)    bf16
    # b2_ref : (1, NC_P)         f32
    # out_ref: (1, nb, NC_P)     f32 logits (lane-dense padded classes)
    nb, hwp, kp = x_ref.shape
    cmid_p = w1_ref.shape[1]

    # One fat-M MXU matmul: (nb*hwp, Kp) @ (Kp, CMID_P), bf16 in / f32 acc.
    patches = x_ref[...].reshape(nb * hwp, kp)
    h = jnp.dot(patches, w1_ref[...], preferred_element_type=jnp.float32)
    h = jnp.maximum(h + b1_ref[...], 0.0)                   # bias + ReLU in f32 (VPU)

    # Global average pool: f32 spatial sum (XLU reduce) then a single VPU scale.
    h3 = h.reshape(nb, hwp, cmid_p)
    if hwp != hw:  # mask out the zero-padded spatial rows (static branch)
        rows = lax.broadcasted_iota(jnp.int32, (nb, hwp, cmid_p), 1)
        h3 = jnp.where(rows < hw, h3, 0.0)
    pooled = jnp.sum(h3, axis=1) * inv_hw                    # (nb, CMID_P) f32

    # Classifier FC, bf16 MXU inputs / f32 accumulate.
    logits = jnp.dot(pooled.astype(w2_ref.dtype), w2_ref[...],
                     preferred_element_type=jnp.float32) + b2_ref[...]
    out_ref[...] = logits.reshape(out_ref.shape)


# ---------------------------------------------------------------------------
# Wrapper / glue
# ---------------------------------------------------------------------------
def _round_up(v, m):
    return (v + m - 1) // m * m


def _im2col_3x3(x_nhwc):
    """3x3 / stride 1 / pad 1 im2col.  (N,H,W,C) -> (N, H*W, 9*C), (ky,kx,c) order."""
    n, h, w, c = x_nhwc.shape
    xp = jnp.pad(x_nhwc, ((0, 0), (1, 1), (1, 1), (0, 0)))
    cols = [xp[:, ky:ky + h, kx:kx + w, :] for ky in range(3) for kx in range(3)]
    return jnp.concatenate(cols, axis=-1).reshape(n, h * w, 9 * c)


def model_v1_forward(x_nchw, params, *, batch_tile=1):
    """Forward pass of Model_v1 (== backbone forward).  x_nchw: (N, Cin, H, W) f32."""
    w1, b1, w2, b2 = params               # w1: (3,3,Cin,Cmid)  b1: (Cmid,)
    n, cin, h, w = x_nchw.shape           # w2: (Cmid, n_class) b2: (n_class,)
    kh, kw, _, cmid = w1.shape
    n_class = w2.shape[1]
    hw = h * w

    # MXU / lane friendly padded sizes (everything lane-dense on the 128 axis).
    kp = _round_up(kh * kw * cin, 128)    # im2col contraction axis
    cmid_p = _round_up(cmid, 128)         # hidden width
    nc_p = _round_up(n_class, 128)        # output classes (sliced back below)
    hwp = _round_up(hw, 8)                # spatial rows -> sublane multiple

    # Batch block: divide N exactly, and keep >= 2 grid blocks when N >= 2 so
    # the "parallel" axis feeds both v7x TensorCores.
    nb = max(1, min(batch_tile, n))
    if n >= 2:
        nb = max(1, min(nb, n // 2))
    while n % nb:
        nb -= 1

    # --- glue: NCHW -> NHWC, lane-dense im2col patches, bf16 MXU stream -------
    x_nhwc = jnp.transpose(x_nchw, (0, 2, 3, 1))
    patches = _im2col_3x3(x_nhwc)                                   # (N, hw, 9*cin)
    patches = jnp.pad(patches, ((0, 0), (0, hwp - hw), (0, kp - kh * kw * cin)))
    patches = patches.astype(jnp.bfloat16)

    # --- pad / repack weights once (lane-dense, tap-major conv weights) -------
    w1_p = jnp.pad(w1.reshape(kh * kw * cin, cmid),
                   ((0, kp - kh * kw * cin), (0, cmid_p - cmid))).astype(jnp.bfloat16)
    b1_p = jnp.pad(b1, (0, cmid_p - cmid)).reshape(1, cmid_p).astype(jnp.float32)
    w2_p = jnp.pad(w2, ((0, cmid_p - cmid), (0, nc_p - n_class))).astype(jnp.bfloat16)
    b2_p = jnp.pad(b2, (0, nc_p - n_class)).reshape(1, nc_p).astype(jnp.float32)

    kernel = functools.partial(backbone_kernel, hw=hw, inv_hw=1.0 / float(hw))

    grid = (n // nb,)                     # batch blocks only (spatial grid collapsed)

    # --- honest (lane-padded, double-buffered) VMEM budget --------------------
    vmem_est = (
        2 * nb * hwp * kp * 2                       # x patches block, bf16, 2 bufs
        + 2 * (kp * cmid_p + cmid_p * nc_p) * 2     # weights, bf16, 2 bufs
        + 2 * (cmid_p + nc_p) * 4                   # biases, f32, 2 bufs
        + 2 * nb * nc_p * 4                         # output block, f32, 2 bufs
        + 2 * nb * hwp * cmid_p * 4                 # in-kernel h / pooled temporaries
    )
    if vmem_est > 24 * 1024 * 1024:
        compiler_params = pltpu.CompilerParams(
            dimension_semantics=("parallel",),
            vmem_limit_bytes=min(int(vmem_est * 3 // 2), 60 * 1024 * 1024))
    else:
        compiler_params = pltpu.CompilerParams(dimension_semantics=("parallel",))

    out = pl.pallas_call(
        kernel,
        out_shape=jax.ShapeDtypeStruct((n // nb, nb, nc_p), jnp.float32),
        grid_spec=pltpu.PrefetchScalarGridSpec(
            num_scalar_prefetch=0,
            grid=grid,
            in_specs=[
                # Lane-dense patch block per batch block.
                pl.BlockSpec((nb, hwp, kp), lambda b: (b, 0, 0)),
                # Weights/biases: constant index maps -> loaded once, VMEM-resident.
                pl.BlockSpec((kp, cmid_p), lambda b: (0, 0)),
                pl.BlockSpec((1, cmid_p), lambda b: (0, 0)),
                pl.BlockSpec((cmid_p, nc_p), lambda b: (0, 0)),
                pl.BlockSpec((1, nc_p), lambda b: (0, 0)),
            ],
            # Output block's last two dims equal the full array dims -> dense store.
            out_specs=pl.BlockSpec((1, nb, nc_p), lambda b: (b, 0, 0)),
        ),
        compiler_params=compiler_params,
    )(patches, w1_p, b1_p, w2_p, b2_p)

    return out.reshape(n, nc_p)[:, :n_class]


def make_params(cin, cmid, n_class):
    """Deterministic 'pretrained' backbone parameters."""
    key = jax.random.PRNGKey(0)
    k1, k2, k3, k4 = jax.random.split(key, 4)
    w1 = jax.random.normal(k1, (3, 3, cin, cmid), jnp.float32) * (1.0 / (3.0 * cin ** 0.5))
    b1 = jax.random.normal(k2, (cmid,), jnp.float32) * 0.01
    w2 = jax.random.normal(k3, (cmid, n_class), jnp.float32) * (1.0 / cmid ** 0.5)
    b2 = jax.random.normal(k4, (n_class,), jnp.float32) * 0.01
    return w1, b1, w2, b2


# ---------------------------------------------------------------------------
# Pure-JAX reference (correctness check; matches the kernel's bf16-MXU-input /
# f32-accumulate precision policy).
# ---------------------------------------------------------------------------
def reference_forward(x_nchw, params):
    w1, b1, w2, b2 = params
    n, cin, h, w = x_nchw.shape
    cmid = w1.shape[-1]
    x_nhwc = jnp.transpose(x_nchw, (0, 2, 3, 1))
    patches = _im2col_3x3(x_nhwc)                           # (n, h*w, 9*cin)
    w1m = w1.reshape(9 * cin, cmid)
    hact = jnp.einsum("nsk,kc->nsc",
                      patches.astype(jnp.bfloat16), w1m.astype(jnp.bfloat16),
                      preferred_element_type=jnp.float32)
    hact = jnp.maximum(hact + b1[None, None, :], 0.0)
    pooled = jnp.mean(hact, axis=1)
    return (jnp.dot(pooled.astype(jnp.bfloat16), w2.astype(jnp.bfloat16),
                    preferred_element_type=jnp.float32) + b2[None, :])


# TODO(synk): the unused `self.fc` head (and the dropout arg) from __init__ is not
# part of forward() and is therefore intentionally not implemented.

if __name__ == "__main__":
    N, Cin, H, W = 2, 4, 16, 16
    Cmid, n_class = 32, 10

    key = jax.random.PRNGKey(0)
    x = jax.random.normal(key, (N, Cin, H, W), jnp.float32)
    params = make_params(Cin, Cmid, n_class)

    out = model_v1_forward(x, params)
    out = jax.block_until_ready(out)

    ref = reference_forward(x, params)
    assert out.shape == (N, n_class)
    max_err = float(jnp.max(jnp.abs(out - ref)))
    assert max_err < 2e-2, f"max abs error {max_err}"
    print("KERNEL_OK")
</pallas_src>

<mosaic_0001>
module attributes {stable_mosaic.version = 11 : i64} {
  func.func @backbone_kernel(%arg0: i32, %arg1: memref<1x256x128xbf16, #tpu.memory_space<vmem>>, %arg2: memref<128x128xbf16, #tpu.memory_space<vmem>>, %arg3: memref<1x128xf32, #tpu.memory_space<vmem>>, %arg4: memref<128x128xbf16, #tpu.memory_space<vmem>>, %arg5: memref<1x128xf32, #tpu.memory_space<vmem>>, %arg6: memref<1x1x128xf32, #tpu.memory_space<vmem>>) attributes {dimension_semantics = [#tpu.dimension_semantics<parallel>], iteration_bounds = array<i64: 2>, scalar_prefetch = 0 : i64, scratch_operands = 0 : i64, tpu.core_type = #tpu.core_type<tc>, window_params = [{transform_indices = @transform_0, window_bounds = array<i64: 1, 256, 128>}, {pipeline_mode = #tpu.pipeline_mode<synchronous>, transform_indices = @transform_1, window_bounds = array<i64: 128, 128>}, {pipeline_mode = #tpu.pipeline_mode<synchronous>, transform_indices = @transform_2, window_bounds = array<i64: 1, 128>}, {pipeline_mode = #tpu.pipeline_mode<synchronous>, transform_indices = @transform_3, window_bounds = array<i64: 128, 128>}, {pipeline_mode = #tpu.pipeline_mode<synchronous>, transform_indices = @transform_4, window_bounds = array<i64: 1, 128>}, {transform_indices = @transform_5, window_bounds = array<i64: 1, 1, 128>}]} {
    %c0 = arith.constant 0 : index
    %c0_0 = arith.constant 0 : index
    %c0_1 = arith.constant 0 : index
    %0 = vector.load %arg1[%c0, %c0_0, %c0_1] : memref<1x256x128xbf16, #tpu.memory_space<vmem>>, vector<1x256x128xbf16>
    %1 = vector.shape_cast %0 : vector<1x256x128xbf16> to vector<256x128xbf16>
    %c0_2 = arith.constant 0 : index
    %c0_3 = arith.constant 0 : index
    %2 = vector.load %arg2[%c0_2, %c0_3] : memref<128x128xbf16, #tpu.memory_space<vmem>>, vector<128x128xbf16>
    %cst = arith.constant dense<0.000000e+00> : vector<256x128xf32>
    %3 = tpu.matmul %1, %2, %cst {dimension_numbers = #tpu.dot_dimension_numbers<[1], [0], [0], [1], [0, 0, 1, 1], [], []>} : vector<256x128xbf16>, vector<128x128xbf16>, vector<256x128xf32> -> vector<256x128xf32>
    %c0_4 = arith.constant 0 : index
    %c0_5 = arith.constant 0 : index
    %4 = vector.load %arg3[%c0_4, %c0_5] : memref<1x128xf32, #tpu.memory_space<vmem>>, vector<1x128xf32>
    %5 = vector.broadcast %4 : vector<1x128xf32> to vector<256x128xf32>
    %6 = arith.addf %3, %5 : vector<256x128xf32>
    %cst_6 = arith.constant 0.000000e+00 : f32
    %7 = vector.broadcast %cst_6 : f32 to vector<256x128xf32>
    %8 = arith.maximumf %6, %7 : vector<256x128xf32>
    %9 = vector.shape_cast %8 : vector<256x128xf32> to vector<1x256x128xf32>
    %cst_7 = arith.constant dense<0.000000e+00> : vector<1x128xf32>
    %10 = vector.multi_reduction <add>, %9, %cst_7 [1] : vector<1x256x128xf32> to vector<1x128xf32>
    %cst_8 = arith.constant 3.906250e-03 : f32
    %11 = vector.broadcast %cst_8 : f32 to vector<1x128xf32>
    %12 = arith.mulf %10, %11 : vector<1x128xf32>
    %13 = arith.truncf %12 : vector<1x128xf32> to vector<1x128xbf16>
    %c0_9 = arith.constant 0 : index
    %c0_10 = arith.constant 0 : index
    %14 = vector.load %arg4[%c0_9, %c0_10] : memref<128x128xbf16, #tpu.memory_space<vmem>>, vector<128x128xbf16>
    %cst_11 = arith.constant dense<0.000000e+00> : vector<1x128xf32>
    %15 = tpu.matmul %13, %14, %cst_11 {dimension_numbers = #tpu.dot_dimension_numbers<[1], [0], [0], [1], [0, 0, 1, 1], [], []>} : vector<1x128xbf16>, vector<128x128xbf16>, vector<1x128xf32> -> vector<1x128xf32>
    %c0_12 = arith.constant 0 : index
    %c0_13 = arith.constant 0 : index
    %16 = vector.load %arg5[%c0_12, %c0_13] : memref<1x128xf32, #tpu.memory_space<vmem>>, vector<1x128xf32>
    %17 = arith.addf %15, %16 : vector<1x128xf32>
    %18 = vector.shape_cast %17 : vector<1x128xf32> to vector<1x1x128xf32>
    %c0_14 = arith.constant 0 : index
    %c0_15 = arith.constant 0 : index
    %c0_16 = arith.constant 0 : index
    %19 = vector.load %arg6[%c0_14, %c0_15, %c0_16] : memref<1x1x128xf32, #tpu.memory_space<vmem>>, vector<1x1x128xf32>
    tpu.vector_store %arg6[%c0_14, %c0_15, %c0_16], %18 {strides = array<i32>} : memref<1x1x128xf32, #tpu.memory_space<vmem>>, vector<1x1x128xf32>,
    return
  }
  func.func @transform_0(%arg0: i32) -> (i32, i32, i32) {
    %c0_i32 = arith.constant 0 : i32
    %c0_i32_0 = arith.constant 0 : i32
    %c0_i32_1 = arith.constant 0 : i32
    return %arg0, %c0_i32, %c0_i32_0 : i32, i32, i32
  }
  func.func @transform_1(%arg0: i32) -> (i32, i32) {
    %c0_i32 = arith.constant 0 : i32
    %c0_i32_0 = arith.constant 0 : i32
    %c0_i32_1 = arith.constant 0 : i32
    return %c0_i32, %c0_i32_0 : i32, i32
  }
  func.func @transform_2(%arg0: i32) -> (i32, i32) {
    %c0_i32 = arith.constant 0 : i32
    %c0_i32_0 = arith.constant 0 : i32
    %c0_i32_1 = arith.constant 0 : i32
    return %c0_i32, %c0_i32_0 : i32, i32
  }
  func.func @transform_3(%arg0: i32) -> (i32, i32) {
    %c0_i32 = arith.constant 0 : i32
    %c0_i32_0 = arith.constant 0 : i32
    %c0_i32_1 = arith.constant 0 : i32
    return %c0_i32, %c0_i32_0 : i32, i32
  }
  func.func @transform_4(%arg0: i32) -> (i32, i32) {
    %c0_i32 = arith.constant 0 : i32
    %c0_i32_0 = arith.constant 0 : i32
    %c0_i32_1 = arith.constant 0 : i32
    return %c0_i32, %c0_i32_0 : i32, i32
  }
  func.func @transform_5(%arg0: i32) -> (i32, i32, i32) {
    %c0_i32 = arith.constant 0 : i32
    %c0_i32_0 = arith.constant 0 : i32
    %c0_i32_1 = arith.constant 0 : i32
    return %arg0, %c0_i32, %c0_i32_0 : i32, i32, i32
  }
}

</mosaic_0001>

<bundles_post_ra>
// kernel: tpu_custom_call.1
= control target key start
LH: loop header
LB: loop body
LE: loop exit
PB: predicated region body
PF: predicated region fallthrough
CT: control target
= control target key end

     0   :  { %10 = vsyncpa [#allocation3], 0  ;;  %s1602_s0 = inlined_call_operand.hbm [shape: bf16[2,256,128], index: 0, kind: input, shape index: {}]   ;;  %s1603_s1 = inlined_call_operand.hbm [shape: bf16[128,128], index: 1, kind: input, shape index: {}]   ;;  %s1604_s2 = inlined_call_operand.vmem [shape: f32[1,128], index: 2, kind: input, shape index: {}]   ;;  %s1605_s3 = inlined_call_operand.hbm [shape: bf16[128,128], index: 3, kind: input, shape index: {}]   ;;  %s1606_s4 = inlined_call_operand.vmem [shape: f32[1,128], index: 4, kind: input, shape index: {}]   ;;  %s1607_s5 = inlined_call_operand.hbm [shape: f32[2,1,128], index: 5, kind: output, shape index: {}]  }
   0x1   :  { %12 = vsyncpa [#allocation3 + $0x1], 0 }
   0x2   :  { %13 = vsyncpa [#allocation6], 0 }
   0x3   :  { %14 = vsyncpa [#allocation4], 0 }
   0x4   :  { %16 = vsyncpa [#allocation4 + $0x1], 0  ;;  %s1348_s18 = smov 0   ;;  %s1350_s19 = smov 0  }
   0x5   :  { %s1352_s20 = smov 0   ;;  %s1354_s21 = smov 0  }
   0x6 LB: > { %s1369_s22 = sadd.s32 4294967295, %s1308_s21   ;;  %s907_s23 = sadd.s32 4294967294, %s1308_s21   ;;  %s1308_s21 = sphi %s1354_s21, %s1630_s21   ;;  %s1304_s20 = sphi %s1352_s20, %s1629_s20   ;;  %s1300_s19 = sphi %s1350_s19, %s1628_s19   ;;  %s1296_s18 = sphi %s1348_s18, %s1627_s18  }
   0x7   : > { %p42_p0 = scmp.ne.s32.totalorder %s1300_s19, %s1296_s18  ;;  %p1608_p1 = scmp.eq.s32.totalorder %s1369_s22, 0 }
   0x8   : > { %p150_p2 = scmp.eq.s32.totalorder %s1369_s22, 1  ;;  %p156_p3 = scmp.eq.s32.totalorder %s907_s23, 1 }
   0x9   : > { %p1378_p4 = por %p1608_p1, %p42_p0  ;;  %p908_p5 = scmp.ge.s32.totalorder %s1308_s21, 1 }
   0xa   : > { %p1383_p6 = por %p156_p3, %p42_p0  ;;  %p163_p7 = scmp.lt.s32.totalorder %s1308_s21, 3 }
   0xb   : > { %s1613_s24 = scalar_select %p1378_p4, 1, 0 }
   0xc   : > { %s1614_s25 = scalar_select %p1383_p6, 1, 0 }
   0xd   : > { %p1388_p8 = pnand %p908_p5, %p163_p7  ;;  %s1310_s27 = smov [#allocation5]  }
   0xe   : > { %s175_s28 = sshll.u32 %s1310_s27, 4  ;;  %s1311_s30 = smov [#allocation7]   ;;  %s176_s28 = int_to_ptr.vmem [resolvable:$true] %s175_s28 }
   0xf   : > { %s1615_s26 = scalar_select %p1388_p8, 1, 0 }
  0x10   : > { %p1069_p9 = pneg %p1388_p8  ;;  %s191_s6 = sshll.u32 %s1311_s30, 4  ;;  %s192_s6 = int_to_ptr.vmem [resolvable:$true] %s191_s6 }
  0x11   : > { %s1171_s7 = scalar_lea.vmem %s176_s28, 1024  ;;  %p1179_p5 = scmp.lt.s32.totalorder %s176_s28, %s176_s28 }
  0x12   : > { %p1397_p11 = pnand %p1069_p9, %p1608_p1  ;;  %p1172_p13 = scmp.ne.s32.totalorder %s176_s28, %s1171_s7 }
  0x13   : > { %p1180_p7 = scmp.lt.s32.totalorder %s1171_s7, %s1171_s7 }
  0x14   : > { %p1162_p12 = pneg %p1397_p11 }
  0x15   : > { %p1181_p10 = por %p1180_p7, %p1179_p5 }
  0x16   : > { %p1174_p0 = pnand %p1172_p13, %p1162_p12 }
  0x18   : > { %p1175_p3 = pneg %p1174_p0 }
  0x1a   : > { %p1182_p9 = pnand %p1181_p10, %p1175_p3 }
  0x1c   : > { %1185 = shalt.err (!%p1182_p9)
}
  0x1d   : > { %s1609_s8 = smov 64   ;;  %s1313_s9 = smov 4  }
  0x1e   : > { %1072 = dma.hbm_to_vmem [thread:$0]  (!%p1397_p11), %s1603_s1, 1024, %s176_s28, [#allocation6], %s1609_s8, %s1609_s8, %s1313_s9  }
  0x1f   : > { %s1197_s12 = scalar_lea.vmem %s192_s6, 1024  ;;  %p1205_p10 = scmp.lt.s32.totalorder %s192_s6, %s192_s6 }
  0x20   : > { %p1198_p13 = scmp.ne.s32.totalorder %s192_s6, %s1197_s12  ;;  %p1206_p3 = scmp.lt.s32.totalorder %s1197_s12, %s1197_s12 }
  0x22   : > { %p1200_p0 = pnand %p1198_p13, %p1162_p12  ;;  %p1207_p7 = por %p1206_p3, %p1205_p10 }
  0x24   : > { %p1201_p5 = pneg %p1200_p0 }
  0x26   : > { %p1208_p9 = pnand %p1207_p7, %p1201_p5 }
  0x28   : > { %1211 = shalt.err (!%p1208_p9)
}
  0x29   : > { %1075 = dma.hbm_to_vmem [thread:$0]  (!%p1397_p11), %s1605_s3, 1024, %s192_s6, [#allocation6], %s1609_s8, %s1609_s8, %s1313_s9  }
  0x2a   : > { %s1426_s15 = sadd.s32 1, %s1308_s21   ;;  %s29_s16 = sadd.s32 1, %s1304_s20 }
  0x2b   : > { %s26_s17 = ssub.s32 %s1308_s21, %s1426_s15  ;;  %p36_p12 = scmp.ne.s32.totalorder %s1304_s20, %s1300_s19 }
  0x2c   : > { %p27_p13 = scmp.eq.s32.totalorder %s26_s17, 0  ;;  %p37_p0 = scmp.eq.s32.totalorder %s1308_s21, 0 }
  0x2d   : > { %p1436_p5 = por %p150_p2, %p36_p12  ;;  %p1086_p10 = scmp.lt.s32.totalorder %s1308_s21, 2 }
  0x2e   : > { %s1442_s27 = scalar_select %p27_p13, %s1304_s20, %s29_s16  }
  0x2f   : > { %s1617_s23 = scalar_select %p1436_p5, 1, 0 }
  0x30   : > { %p38_p3 = por %p37_p0, %p36_p12  ;;  %s208_s28 = sand.u32 1, %s1304_s20  }
  0x31   : > { %s912_s29 = sshll.u32 %s208_s28, 7  ;;  %s955_s30 = sshll.u32 %s1308_s21, 11 }
  0x32   : > { %s1449_s10 = scalar_lea.hbm %s1602_s0, %s955_s30  ;;  %s212_s11 = scalar_lea.vmem [#allocation2], %s912_s29 }
  0x33   : > { %s219_s12 = sshll.u32 %s212_s11, 4  ;;  %p1453_p2 = pnand %p1086_p10, %p38_p3  ;;  %s1451_s12 = int_to_ptr.vmem [resolvable:$true] %s219_s12 }
  0x34   : > { %s1457_s14 = scalar_lea.sflag [#allocation3], %s208_s28  ;;  %s1212_s16 = scalar_lea.hbm %s1449_s10, 2048 }
  0x35   : > { %p1213_p11 = scmp.ne.s32.totalorder %s1449_s10, %s1212_s16  ;;  %p1214_p7 = pneg %p1453_p2 }
  0x36   : > { %s1217_s29 = scalar_lea.hbm %s1602_s0, 4096  ;;  %p1218_p13 = scmp.lt.s32.totalorder %s1449_s10, %s1602_s0 }
  0x37   : > { %p1215_p9 = pnand %p1214_p7, %p1213_p11  ;;  %p1219_p0 = scmp.lt.s32.totalorder %s1217_s29, %s1212_s16 }
  0x39   : > { %p1216_p12 = pneg %p1215_p9  ;;  %p1220_p10 = por %p1219_p0, %p1218_p13 }
  0x3b   : > { %p1221_p3 = pnand %p1220_p10, %p1216_p12 }
  0x3d   : > { %1224 = shalt.err (!%p1221_p3)
}
  0x3e   : > { %s1225_s28 = scalar_lea.vmem %s1451_s12, 2048  ;;  %s1314_s11 = smov [#allocation2]  }
  0x3f   : > { %p1226_p1 = scmp.ne.s32.totalorder %s1451_s12, %s1225_s28  ;;  %s1230_s8 = sshll.u32 %s1314_s11, 4  ;;  %s1231_s8 = int_to_ptr.vmem [resolvable:$false] %s1230_s8 }
  0x40   : > { %s1232_s17 = scalar_lea.vmem %s1231_s8, 4096  ;;  %p1233_p9 = scmp.lt.s32.totalorder %s1451_s12, %s1231_s8 }
  0x41   : > { %p1228_p6 = pnand %p1226_p1, %p1214_p7  ;;  %p1234_p5 = scmp.lt.s32.totalorder %s1232_s17, %s1225_s28 }
  0x43   : > { %p1229_p11 = pneg %p1228_p6  ;;  %p1235_p4 = por %p1234_p5, %p1233_p9 }
  0x45   : > { %p1236_p8 = pnand %p1235_p4, %p1229_p11 }
  0x47   : > { %1239 = shalt.err (!%p1236_p8)
}
  0x48   : > { %s1619_s16 = smov 64   ;;  %p1620_p1 = scmp.ne.s32.totalorder %s1615_s26, 0 }
  0x49   : > { %1079 = dma.hbm_to_vmem [thread:$0]  (!%p1453_p2), %s1449_s10, 2048, %s1451_s12, %s1457_s14, %s1619_s16, %s1619_s16, %s1313_s9  }
  0x4a   : > { %231 = sbr.rel (%p1620_p1) target bundleno = 606 (0x25e), region = 40  ;;  %s1484_s30 = sand.u32 (!%p1620_p1), 1, %s1300_s19  }
  0x4b   : > { %s916_s8 = sshll.u32 (!%p1620_p1), %s1484_s30, 7  ;;  %s234_s29 = scalar_lea.sflag (!%p1620_p1), [#allocation3], %s1484_s30 }
  0x4c   : > { %s1488_s6 = scalar_lea.vmem (!%p1620_p1), [#allocation2], %s916_s8  ;;  %p1621_p4 = scmp.ne.s32.totalorder (!%p1620_p1), %s1613_s24, 0 }
  0x4f   : > { %1283 = dma.done.wait (%p1621_p4), %s234_s29, 2048  }
  0x50   : > { %1285 = vsyncadd (%p1621_p4), %s234_s29, 4294965248  ;;  %p1622_p6 = scmp.eq.s32.totalorder %s1369_s22, 0 }
  0x52   : > { %1287 = dma.done.wait (%p1622_p6), [#allocation6], 2048   ;;  %p1623_p8 = pmov %p1622_p6 }
  0x53   : > { %v1128_v0 = vld [vmem:[#allocation5 + $0x38] sm:$0xff]   ;;  %v1129_v1 = vld [vmem:[#allocation5 + $0x30] sm:$0xff]   ;;  %v1130_v2 = vld [vmem:[#allocation5 + $0x28] sm:$0xff]   ;;  %v1315_v25 = vmov 0.0   ;;  %vm1316_vm0 = vmmov 0   ;;  %s952_s12 = sshll.u32 %s1369_s22, 4 }
  0x54   : > { %1289 = vsyncadd (%p1623_p8), [#allocation6], 4294965248  ;;  %989 = vmatprep.subr.bf16.mxu0 %v1128_v0  ;;  %v1131_v3 = vld [vmem:[#allocation5 + $0x20] sm:$0xff]   ;;  %v1132_v5 = vld [vmem:[#allocation5 + $0x18] sm:$0xff]   ;;  %1037 = vmatprep.subr.bf16.mxu1 %v1315_v25  ;;  %s270_s13 = scalar_lea.vmem [#allocation8], %s1484_s30  ;;  %s1559_s11 = scalar_lea.hbm %s1607_s5, %s952_s12 }
  0x55   : > { %990 = vmatpush3.bf16.msra.mxu0 %v1128_v0  ;;  %v1136_v4 = vld [vmem:[%s1488_s6] sm:$0xff]   ;;  %v1133_v6 = vld [vmem:[#allocation5 + $0x10] sm:$0xff]   ;;  %v1134_v7 = vld [vmem:[#allocation5 + $0x8] sm:$0xff]   ;;  %1053 = vmatprep.mubr.msk.bf16.mxu1 %vm1316_vm0, %v1315_v25  ;;  %s822_s14 = sshll.u32 %s270_s13, 4  ;;  %s810_s17 = scalar_lea.sflag [#allocation4], %s1484_s30  ;;  %s1561_s14 = int_to_ptr.vmem [resolvable:$true] %s822_s14 }
  0x56   : > { %991 = vmatprep.subr.bf16.mxu0 %v1129_v1  ;;  %1005 = vmatprep.mubr.bf16.mxu0 %v1136_v4  ;;  %v1135_v8 = vld [vmem:[#allocation5] sm:$0xff]   ;;  %v1137_v9 = vld [vmem:[%s1488_s6 + $0x8] sm:$0xff]   ;;  %v1138_v10 = vld [vmem:[%s1488_s6 + $0x10] sm:$0xff]   ;;  %s1240_s16 = scalar_lea.vmem %s1561_s14, 16  ;;  %p1624_p2 = scmp.ne.s32.totalorder %s1617_s23, 0 }
  0x57   : > { %v1139_v11 = vld [vmem:[%s1488_s6 + $0x18] sm:$0xff]   ;;  %v1140_v12 = vld [vmem:[%s1488_s6 + $0x20] sm:$0xff]   ;;  %v1141_v13 = vld [vmem:[%s1488_s6 + $0x28] sm:$0xff]   ;;  %p1241_p5 = scmp.ne.s32.totalorder %s1561_s14, %s1240_s16  ;;  %s1317_s22 = smov [#allocation8]  }
  0x58   : > { %v1142_v14 = vld [vmem:[%s1488_s6 + $0x30] sm:$0xff]   ;;  %v1143_v15 = vld [vmem:[%s1488_s6 + $0x38] sm:$0xff]   ;;  %v1144_v16 = vld [vmem:[%s1488_s6 + $0x40] sm:$0xff]   ;;  %s1244_s8 = sshll.u32 %s1317_s22, 4  ;;  %s1245_s8 = int_to_ptr.vmem [resolvable:$false] %s1244_s8 }
  0x59   : > { %992 = vmatpush3.bf16.msra.mxu0 %v1129_v1  ;;  %v1145_v17 = vld [vmem:[%s1488_s6 + $0x48] sm:$0xff]   ;;  %v1146_v18 = vld [vmem:[%s1488_s6 + $0x50] sm:$0xff]   ;;  %v1147_v19 = vld [vmem:[%s1488_s6 + $0x58] sm:$0xff]   ;;  %p1242_p7 = pnand %p1241_p5, %p1624_p2  ;;  %s1246_s29 = scalar_lea.vmem %s1245_s8, 32 }
  0x5a   : > { %993 = vmatprep.subr.bf16.mxu0 %v1130_v2  ;;  %v1148_v20 = vld [vmem:[%s1488_s6 + $0x60] sm:$0xff]   ;;  %v1149_v21 = vld [vmem:[%s1488_s6 + $0x68] sm:$0xff]   ;;  %v1150_v22 = vld [vmem:[%s1488_s6 + $0x70] sm:$0xff]   ;;  %p1247_p13 = scmp.lt.s32.totalorder %s1561_s14, %s1245_s8  ;;  %p1248_p0 = scmp.lt.s32.totalorder %s1246_s29, %s1240_s16 }
  0x5b   : > { %v1151_v23 = vld [vmem:[%s1488_s6 + $0x78] sm:$0xff]   ;;  %v1153_v26 = vld [vmem:[#allocation7 + $0x30] sm:$0xff]   ;;  %v1154_v27 = vld [vmem:[#allocation7 + $0x28] sm:$0xff]   ;;  %p1243_p12 = pneg %p1242_p7 }
  0x5c   : > { %v1152_v24 = vld [vmem:[#allocation7 + $0x38] sm:$0xff]   ;;  %v1155_v28 = vld [vmem:[#allocation7 + $0x20] sm:$0xff]   ;;  %v1157_v30 = vld [vmem:[#allocation7 + $0x10] sm:$0xff]   ;;  %p1249_p10 = por %p1248_p0, %p1247_p13 }
  0x5d   : > { %994 = vmatpush3.bf16.msra.mxu0 %v1130_v2  ;;  %1038 = vmatpush3.bf16.msra.mxu1 %v1152_v24  ;;  %v1156_v29 = vld [vmem:[#allocation7 + $0x18] sm:$0xff]   ;;  %v1158_v31 = vld [vmem:[#allocation7 + $0x8] sm:$0xff]   ;;  %v1159_v32 = vld [vmem:[#allocation7] sm:$0xff]  }
  0x5e   : > { %995 = vmatprep.subr.bf16.mxu0 %v1131_v3  ;;  %1039 = vmatprep.subr.bf16.mxu1 %v1315_v25  ;;  %v1517_v35 = vld [vmem:[%s1604_s2] ss:$0 sm:$0xff]  ;;  %p1250_p3 = pnand %p1249_p10, %p1243_p12 }
  0x61   : > { %996 = vmatpush3.bf16.msra.mxu0 %v1131_v3  ;;  %1040 = vmatpush3.bf16.msra.mxu1 %v1153_v26 }
  0x62   : > { %997 = vmatprep.subr.bf16.mxu0 %v1132_v5  ;;  %1041 = vmatprep.subr.bf16.mxu1 %v1315_v25 }
  0x65   : > { %998 = vmatpush3.bf16.msra.mxu0 %v1132_v5  ;;  %1042 = vmatpush3.bf16.msra.mxu1 %v1154_v27 }
  0x66   : > { %999 = vmatprep.subr.bf16.mxu0 %v1133_v6  ;;  %1043 = vmatprep.subr.bf16.mxu1 %v1315_v25 }
  0x69   : > { %1000 = vmatpush3.bf16.msra.mxu0 %v1133_v6  ;;  %1044 = vmatpush3.bf16.msra.mxu1 %v1155_v28 }
  0x6a   : > { %1001 = vmatprep.subr.bf16.mxu0 %v1134_v7  ;;  %1045 = vmatprep.subr.bf16.mxu1 %v1315_v25 }
  0x6d   : > { %1002 = vmatpush3.bf16.msra.mxu0 %v1134_v7  ;;  %1046 = vmatpush3.bf16.msra.mxu1 %v1156_v29 }
  0x6e   : > { %1003 = vmatprep.subr.bf16.mxu0 %v1135_v8  ;;  %1047 = vmatprep.subr.bf16.mxu1 %v1315_v25 }
  0x71   : > { %1004 = vmatpush3.bf16.msra.mxu0 %v1135_v8  ;;  %1048 = vmatpush3.bf16.msra.mxu1 %v1157_v30 }
  0x72   : > { %1049 = vmatprep.subr.bf16.mxu1 %v1315_v25 }
  0x74   : > { %1006 = vmatmul.mubr.bf16.vlgmr.msra.gmra.mxu0 %v1137_v9 }
  0x75   : > { %1009 = vmatprep.mubr.bf16.mxu0 %v1138_v10  ;;  %1050 = vmatpush3.bf16.msra.mxu1 %v1158_v31 }
  0x76   : > { %1051 = vmatprep.subr.bf16.mxu1 %v1315_v25 }
  0x79   : > { %1052 = vmatpush3.bf16.msra.mxu1 %v1159_v32 }
  0x7c   : > { %1010 = vmatmul.mubr.bf16.gmra.mxu0 %v1139_v11 }
  0x7d   : > { %1013 = vmatprep.mubr.bf16.mxu0 %v1140_v12 }
  0x84   : > { %1014 = vmatmul.mubr.bf16.gmra.mxu0 %v1141_v13 }
  0x85   : > { %1017 = vmatprep.mubr.bf16.mxu0 %v1142_v14 }
  0x8c   : > { %1018 = vmatmul.mubr.bf16.gmra.mxu0 %v1143_v15 }
  0x8d   : > { %1021 = vmatprep.mubr.bf16.mxu0 %v1144_v16 }
  0x94   : > { %1022 = vmatmul.mubr.bf16.gmra.mxu0 %v1145_v17 }
  0x95   : > { %1025 = vmatprep.mubr.bf16.mxu0 %v1146_v18 }
  0x9c   : > { %1026 = vmatmul.mubr.bf16.gmra.mxu0 %v1147_v19 }
  0x9d   : > { %1029 = vmatprep.mubr.bf16.mxu0 %v1148_v20 }
  0xa4   : > { %1030 = vmatmul.mubr.bf16.gmra.mxu0 %v1149_v21 }
  0xa5   : > { %1033 = vmatprep.mubr.bf16.mxu0 %v1150_v22 }
  0xac   : > { %1034 = vmatmul.mubr.bf16.gmra.mxu0 %v1151_v23 }
 0x134   : > { %v1007_v33 = vpop.f32.mrf.mxu0 }
 0x135   : > { %v514_v39 = vadd.f32 %v1007_v33, %v1517_v35 }
 0x136   : > { %v505_v34 = vpop.f32.mrf.mxu0 }
 0x137   : > { %v506_v37 = vadd.f32 %v1517_v35, %v505_v34  ;;  %v634_v46 = vmax.f32 %v514_v39, 0.0 }
 0x138   : > { %v1008_v36 = vpop.f32.mrf.mxu0 }
 0x139   : > { %v632_v42 = vmax.f32 %v506_v37, 0.0  ;;  %v517_v43 = vadd.f32 %v1008_v36, %v1517_v35 }
 0x13a   : > { %v508_v38 = vpop.f32.mrf.mxu0 }
 0x13b   : > { %v509_v40 = vadd.f32 %v1517_v35, %v508_v38  ;;  %v635_v50 = vmax.f32 %v517_v43, 0.0 }
 0x13c   : > { %v1011_v41 = vpop.f32.mrf.mxu0 }
 0x13d   : > { %v633_v44 = vmax.f32 %v509_v40, 0.0  ;;  %v530_v53 = vadd.f32 %v1011_v41, %v1517_v35 }
 0x13e   : > { %v521_v45 = vpop.f32.mrf.mxu0 }
 0x13f   : > { %v664_v47 = vadd.f32 %v633_v44, %v632_v42  ;;  %v522_v48 = vadd.f32 %v1517_v35, %v521_v45  ;;  %v638_v62 = vmax.f32 %v530_v53, 0.0 }
 0x140   : > { %v1012_v49 = vpop.f32.mrf.mxu0 }
 0x141   : > { %v665_v51 = vadd.f32 %v664_v47, %v634_v46  ;;  %v636_v54 = vmax.f32 %v522_v48, 0.0  ;;  %v533_v59 = vadd.f32 %v1012_v49, %v1517_v35 }
 0x142   : > { %v524_v52 = vpop.f32.mrf.mxu0 }
 0x143   : > { %v666_v55 = vadd.f32 %v665_v51, %v635_v50  ;;  %v525_v56 = vadd.f32 %v1517_v35, %v524_v52  ;;  %v639_v2 = vmax.f32 %v533_v59, 0.0 }
 0x144   : > { %v1015_v57 = vpop.f32.mrf.mxu0 }
 0x145   : > { %v667_v58 = vadd.f32 %v666_v55, %v636_v54  ;;  %v637_v60 = vmax.f32 %v525_v56, 0.0  ;;  %v546_v5 = vadd.f32 %v1015_v57, %v1517_v35 }
 0x146   : > { %v537_v61 = vpop.f32.mrf.mxu0 }
 0x147   : > { %v668_v63 = vadd.f32 %v667_v58, %v637_v60  ;;  %v538_v0 = vadd.f32 %v1517_v35, %v537_v61  ;;  %v642_v14 = vmax.f32 %v546_v5, 0.0 }
 0x148   : > { %v1016_v1 = vpop.f32.mrf.mxu0 }
 0x149   : > { %v669_v3 = vadd.f32 %v668_v63, %v638_v62  ;;  %v640_v6 = vmax.f32 %v538_v0, 0.0  ;;  %v549_v11 = vadd.f32 %v1016_v1, %v1517_v35 }
 0x14a   : > { %v540_v4 = vpop.f32.mrf.mxu0 }
 0x14b   : > { %v670_v7 = vadd.f32 %v669_v3, %v639_v2  ;;  %v541_v8 = vadd.f32 %v1517_v35, %v540_v4  ;;  %v643_v18 = vmax.f32 %v549_v11, 0.0 }
 0x14c   : > { %v1019_v9 = vpop.f32.mrf.mxu0 }
 0x14d   : > { %v671_v10 = vadd.f32 %v670_v7, %v640_v6  ;;  %v641_v12 = vmax.f32 %v541_v8, 0.0  ;;  %v562_v21 = vadd.f32 %v1019_v9, %v1517_v35 }
 0x14e   : > { %v553_v13 = vpop.f32.mrf.mxu0 }
 0x14f   : > { %v672_v15 = vadd.f32 %v671_v10, %v641_v12  ;;  %v554_v16 = vadd.f32 %v1517_v35, %v553_v13  ;;  %v646_v30 = vmax.f32 %v562_v21, 0.0 }
 0x150   : > { %v1020_v17 = vpop.f32.mrf.mxu0 }
 0x151   : > { %v673_v19 = vadd.f32 %v672_v15, %v642_v14  ;;  %v644_v22 = vmax.f32 %v554_v16, 0.0  ;;  %v565_v27 = vadd.f32 %v1020_v17, %v1517_v35 }
 0x152   : > { %v556_v20 = vpop.f32.mrf.mxu0 }
 0x153   : > { %v674_v23 = vadd.f32 %v673_v19, %v643_v18  ;;  %v557_v24 = vadd.f32 %v1517_v35, %v556_v20  ;;  %v647_v34 = vmax.f32 %v565_v27, 0.0 }
 0x154   : > { %v1023_v25 = vpop.f32.mrf.mxu0 }
 0x155   : > { %v675_v26 = vadd.f32 %v674_v23, %v644_v22  ;;  %v645_v28 = vmax.f32 %v557_v24, 0.0  ;;  %v578_v38 = vadd.f32 %v1023_v25, %v1517_v35 }
 0x156   : > { %v569_v29 = vpop.f32.mrf.mxu0 }
 0x157   : > { %v676_v31 = vadd.f32 %v675_v26, %v645_v28  ;;  %v570_v32 = vadd.f32 %v1517_v35, %v569_v29  ;;  %v650_v47 = vmax.f32 %v578_v38, 0.0 }
 0x158   : > { %v1024_v33 = vpop.f32.mrf.mxu0 }
 0x159   : > { %v677_v36 = vadd.f32 %v676_v31, %v646_v30  ;;  %v648_v39 = vmax.f32 %v570_v32, 0.0  ;;  %v581_v44 = vadd.f32 %v1024_v33, %v1517_v35 }
 0x15a   : > { %v572_v37 = vpop.f32.mrf.mxu0 }
 0x15b   : > { %v678_v40 = vadd.f32 %v677_v36, %v647_v34  ;;  %v573_v41 = vadd.f32 %v1517_v35, %v572_v37  ;;  %v651_v51 = vmax.f32 %v581_v44, 0.0 }
 0x15c   : > { %v1027_v42 = vpop.f32.mrf.mxu0 }
 0x15d   : > { %v679_v43 = vadd.f32 %v678_v40, %v648_v39  ;;  %v649_v45 = vmax.f32 %v573_v41, 0.0  ;;  %v594_v54 = vadd.f32 %v1027_v42, %v1517_v35 }
 0x15e   : > { %v585_v46 = vpop.f32.mrf.mxu0 }
 0x15f   : > { %v680_v48 = vadd.f32 %v679_v43, %v649_v45  ;;  %v586_v49 = vadd.f32 %v1517_v35, %v585_v46  ;;  %v654_v63 = vmax.f32 %v594_v54, 0.0 }
 0x160   : > { %v1028_v50 = vpop.f32.mrf.mxu0 }
 0x161   : > { %v681_v52 = vadd.f32 %v680_v48, %v650_v47  ;;  %v652_v55 = vmax.f32 %v586_v49, 0.0  ;;  %v597_v60 = vadd.f32 %v1028_v50, %v1517_v35 }
 0x162   : > { %v588_v53 = vpop.f32.mrf.mxu0 }
 0x163   : > { %v682_v56 = vadd.f32 %v681_v52, %v651_v51  ;;  %v589_v57 = vadd.f32 %v1517_v35, %v588_v53  ;;  %v655_v3 = vmax.f32 %v597_v60, 0.0 }
 0x164   : > { %v1031_v58 = vpop.f32.mrf.mxu0 }
 0x165   : > { %v683_v59 = vadd.f32 %v682_v56, %v652_v55  ;;  %v653_v61 = vmax.f32 %v589_v57, 0.0  ;;  %v610_v6 = vadd.f32 %v1031_v58, %v1517_v35 }
 0x166   : > { %v601_v62 = vpop.f32.mrf.mxu0 }
 0x167   : > { %v684_v0 = vadd.f32 %v683_v59, %v653_v61  ;;  %v602_v1 = vadd.f32 %v1517_v35, %v601_v62  ;;  %v658_v15 = vmax.f32 %v610_v6, 0.0 }
 0x168   : > { %v1032_v2 = vpop.f32.mrf.mxu0 }
 0x169   : > { %v685_v4 = vadd.f32 %v684_v0, %v654_v63  ;;  %v656_v7 = vmax.f32 %v602_v1, 0.0  ;;  %v613_v12 = vadd.f32 %v1032_v2, %v1517_v35 }
 0x16a   : > { %v604_v5 = vpop.f32.mrf.mxu0 }
 0x16b   : > { %v686_v8 = vadd.f32 %v685_v4, %v655_v3  ;;  %v605_v9 = vadd.f32 %v1517_v35, %v604_v5  ;;  %v659_v19 = vmax.f32 %v613_v12, 0.0 }
 0x16c   : > { %v1035_v10 = vpop.f32.mrf.mxu0 }
 0x16d   : > { %v687_v11 = vadd.f32 %v686_v8, %v656_v7  ;;  %v657_v13 = vmax.f32 %v605_v9, 0.0  ;;  %v626_v22 = vadd.f32 %v1035_v10, %v1517_v35 }
 0x16e   : > { %v617_v14 = vpop.f32.mrf.mxu0 }
 0x16f   : > { %v688_v16 = vadd.f32 %v687_v11, %v657_v13  ;;  %v618_v17 = vadd.f32 %v1517_v35, %v617_v14  ;;  %v662_v29 = vmax.f32 %v626_v22, 0.0 }
 0x170   : > { %v1036_v18 = vpop.f32.mrf.mxu0 }
 0x171   : > { %v689_v20 = vadd.f32 %v688_v16, %v658_v15  ;;  %v660_v23 = vmax.f32 %v618_v17, 0.0  ;;  %v629_v27 = vadd.f32 %v1036_v18, %v1517_v35 }
 0x172   : > { %v620_v21 = vpop.f32.mrf.mxu0 }
 0x173   : > { %v690_v24 = vadd.f32 %v689_v20, %v659_v19  ;;  %v621_v25 = vadd.f32 %v1517_v35, %v620_v21  ;;  %v663_v31 = vmax.f32 %v629_v27, 0.0  ;;  %v719_v35 = vld [vmem:[%s1606_s4] sm:$0x1] }
 0x175   : > { %v691_v26 = vadd.f32 %v690_v24, %v660_v23  ;;  %v661_v28 = vmax.f32 %v621_v25, 0.0 }
 0x177   : > { %v692_v30 = vadd.f32 %v691_v26, %v661_v28 }
 0x179   : > { %v693_v32 = vadd.f32 %v692_v30, %v662_v29 }
 0x17b   : > { %v694_v33 = vadd.f32 %v693_v32, %v663_v31 }
 0x17d   : > { %v695_v34 = vrot.slane %v694_v33, 4 }
 0x17f   : > { %v696_v36 = vadd.f32 %v695_v34, %v694_v33 }
 0x181   : > { %v697_v37 = vrot.slane %v696_v36, 2 }
 0x183   : > { %v698_v38 = vadd.f32 %v697_v37, %v696_v36 }
 0x185   : > { %v699_v39 = vrot.slane %v698_v38, 1 }
 0x187   : > { %v700_v40 = vadd.f32 %v699_v39, %v698_v38 }
 0x189   : > { %v701_v41 = vmul.f32 0.00390625, %v700_v40 }
 0x18b   : > { %v702_v42 = vpack.c.bf16 %v701_v41, %v701_v41 }
 0x18d   : > { %1054 = vmatmul.mubr.bf16.vlgmr.msra.gmra.mxu1 %v702_v42 }
 0x24d   : > { %v802_v43 = vpop.f32.mrf.mxu1 }
 0x24e   : > { %v803_v44 = vadd.f32 %v802_v43, %v719_v35 }
 0x24f   : > { %v1055_v45 = vpop.f32.mrf.mxu1 }
 0x250   : > { %808 = vst [vmem:[%s270_s13] sm:$0x1] %v803_v44 }
 0x251   : > { %v805_v46 = vpop.f32.mrf.mxu1 }
 0x252   : > { %1253 = shalt.err (!%p1250_p3)
}
 0x253   : > { %s1254_s6 = scalar_lea.hbm %s1559_s11, 16  ;;  %s1258_s26 = scalar_lea.hbm %s1607_s5, 32 }
 0x254   : > { %p1255_p11 = scmp.ne.s32.totalorder %s1559_s11, %s1254_s6  ;;  %p1259_p4 = scmp.lt.s32.totalorder %s1559_s11, %s1607_s5 }
 0x255   : > { %p1260_p6 = scmp.lt.s32.totalorder %s1258_s26, %s1254_s6 }
 0x256   : > { %p1256_p9 = pnand %p1255_p11, %p1624_p2 }
 0x257   : > { %p1261_p8 = por %p1260_p6, %p1259_p4 }
 0x258   : > { %p1257_p1 = pneg %p1256_p9 }
 0x25a   : > { %p1262_p5 = pnand %p1261_p8, %p1257_p1 }
 0x25c   : > { %1265 = shalt.err (!%p1262_p5)
}
 0x25d   : > { %1067 = dma.vmem_to_hbm [thread:$0]  (%p1624_p2), %s1561_s14, 16, %s1559_s11, %s810_s17   ;;  %v1056_v47 = vpop.f32.mrf.mxu1 }
 0x25e PF: > { %s834_s12 = sand.u32 1, %s1296_s18   ;;  %p1625_p7 = scmp.ne.s32.totalorder %s1614_s25, 0 }
 0x25f   : > { %p1626_p12 = scmp.ge.s32.totalorder %s1308_s21, 2  ;;  %s835_s13 = scalar_lea.sflag [#allocation4], %s834_s12 }
 0x261   : > { %p1081_p13 = pnand %p1626_p12, %p1625_p7 }
 0x263   : > { %p1082_p0 = pneg %p1081_p13 }
 0x265   : > { %1291 = dma.done.wait (%p1082_p0), %s835_s13, 16  }
 0x266   : > { %1293 = vsyncadd (%p1082_p0), %s835_s13, 4294967280  ;;  %p19_p10 = scmp.ge.s32.totalorder %s1426_s15, 4   ;;  %s1627_s18 = smov %s1300_s19 }
 0x267   : > { %s1628_s19 = smov %s1304_s20  ;;  %s1629_s20 = smov %s1442_s27 }
 0x268   : > { %s1630_s21 = smov %s1426_s15  ;;  %21 = sbr.rel (!%p19_p10) target bundleno = 6 (0x6), region = 93 }
 0x26d   :  { %839 = vsyncpa [#allocation3], 1 }
 0x26e   :  { %841 = vsyncpa [#allocation3 + $0x1], 1 }
 0x26f   :  { %842 = vsyncpa [#allocation6], 1 }
 0x270   :  { %843 = vsyncpa [#allocation4], 1 }
 0x271   :  { %845 = vsyncpa [#allocation4 + $0x1], 1 }

</bundles_post_ra>
